<compile_context>
chip_gen: v6e
topology: v6e:2x2x1
jax: 0.10.0
libtpu: 0.0.40
codegen_flags: <defaults>
</compile_context>

<pallas_src>
import jax
import jax.numpy as jnp
from jax import lax
from jax.experimental import pallas as pl
from jax.experimental.pallas import tpu as pltpu

LRELU_SLOPE = 0.1
KERNEL_SIZE = 3
DILATIONS = (1, 3, 5)


def _leaky_relu(x, slope=LRELU_SLOPE):
    return jnp.where(x >= 0, x, slope * x)


def _fused_dilated_conv(act, halo, w_ref, b_ref, layer, dilation):
    """'Same'-padded dilated Conv1d as one tap-fused MXU matmul.

    act:   (C, L) fp32 activations (channels on sublanes, time on lanes).
    halo:  (C, L) fp32 zeros, hoisted once per kernel invocation.
    w_ref: Ref (3, C, 3*C), packed so w[layer, co, k*C + ci] = W_torch[co, ci, k].
    b_ref: Ref (3, C, 1) fp32 biases.
    """
    C, L = act.shape
    # Zero right-halo concatenated at an aligned 128-lane boundary.
    act_p = jnp.concatenate([act, halo], axis=1)            # (C, 2L)
    taps = []
    for k in range(KERNEL_SIZE):
        # padding = get_padding(3, d) = d  =>  y[t] uses x[t + (k - 1) * d]
        s = (k - KERNEL_SIZE // 2) * dilation
        if s == 0:
            taps.append(act)
        else:
            # roll(act_p, -s)[:, t] = act_p[:, (t + s) mod 2L]; out-of-range
            # taps read the zero halo, so no masking is needed.
            taps.append(pltpu.roll(act_p, shift=(-s) % (2 * L), axis=1)[:, :L])
    xcat = jnp.concatenate(taps, axis=0)                    # (3C, L), sublane-aligned
    y = jnp.dot(w_ref[layer], xcat.astype(w_ref.dtype),
                preferred_element_type=jnp.float32)         # (C, L) fp32 accumulate
    return y + b_ref[layer]                                 # (C, 1) broadcasts over L


def resblock_kernel(x_ref, w1_ref, b1_ref, w2_ref, b2_ref, o_ref):
    C, L = x_ref.shape[1], x_ref.shape[2]
    x = x_ref[0].astype(jnp.float32)                        # (C, L)
    halo = jnp.zeros((C, L), jnp.float32)                   # hoisted zero halo
    for i, d in enumerate(DILATIONS):
        xt = _leaky_relu(x)
        xt = _fused_dilated_conv(xt, halo, w1_ref, b1_ref, i, d)
        xt = _leaky_relu(xt)
        xt = _fused_dilated_conv(xt, halo, w2_ref, b2_ref, i, 1)
        x = xt + x
    o_ref[0, :, :] = x.astype(o_ref.dtype)


def _pack_weights(w):
    """(3, Cout, Cin, K) torch Conv1d layout -> (3, Cout, K*Cin) tap-fused."""
    n, co, ci, k = w.shape
    return jnp.transpose(w, (0, 1, 3, 2)).reshape(n, co, k * ci)


def resblock_forward(x_ncl, w1, b1, w2, b2, *, compute_dtype=jnp.float32):
    """x_ncl: (B, C, L). w*: (3, C, C, K) torch layout. b*: (3, C)."""
    B, C, L = x_ncl.shape
    assert L >= 8, "time axis must cover the conv halo"
    w1p = _pack_weights(w1).astype(compute_dtype)
    w2p = _pack_weights(w2).astype(compute_dtype)
    b1r = b1[..., None].astype(jnp.float32)
    b2r = b2[..., None].astype(jnp.float32)
    # TODO(synk): for production-size L, add an L-tile grid axis with a
    # 12-sample halo (cumulative receptive field of the 6 convs) so blocks stay
    # well under v7x's 64 MiB VMEM and DMA can pipeline within a batch element.
    return pl.pallas_call(
        resblock_kernel,
        out_shape=jax.ShapeDtypeStruct((B, C, L), x_ncl.dtype),
        grid_spec=pltpu.PrefetchScalarGridSpec(
            num_scalar_prefetch=0,
            grid=(B,),
            in_specs=[
                pl.BlockSpec((1, C, L), lambda b: (b, 0, 0)),
                pl.BlockSpec(w1p.shape, lambda b: (0, 0, 0)),
                pl.BlockSpec(b1r.shape, lambda b: (0, 0, 0)),
                pl.BlockSpec(w2p.shape, lambda b: (0, 0, 0)),
                pl.BlockSpec(b2r.shape, lambda b: (0, 0, 0)),
            ],
            out_specs=pl.BlockSpec((1, C, L), lambda b: (b, 0, 0)),
        ),
        compiler_params=pltpu.CompilerParams(
            dimension_semantics=("parallel",),
            vmem_limit_bytes=32 * 1024 * 1024,
        ),
    )(x_ncl, w1p, b1r, w2p, b2r)


# ---------------- pure-JAX reference (mirrors PyTorch semantics) -------------
def _conv1d_torch_ref(x_ncl, w_oik, b, dilation):
    pad = dilation  # get_padding(3, d) == d
    y = lax.conv_general_dilated(
        x_ncl, w_oik, window_strides=(1,), padding=[(pad, pad)],
        rhs_dilation=(dilation,), dimension_numbers=("NCH", "OIH", "NCH"))
    return y + b[None, :, None]


def resblock_ref(x_ncl, w1, b1, w2, b2):
    x = x_ncl
    for i, d in enumerate(DILATIONS):
        xt = _leaky_relu(x)
        xt = _conv1d_torch_ref(xt, w1[i], b1[i], d)
        xt = _leaky_relu(xt)
        xt = _conv1d_torch_ref(xt, w2[i], b2[i], 1)
        x = xt + x
    return x


if __name__ == "__main__":
    key = jax.random.PRNGKey(0)
    B, C, L = 2, 16, 128  # small shapes: batch=2, channels=16, seq len=128
    k_x, k_w1, k_b1, k_w2, k_b2 = jax.random.split(key, 5)

    # PyTorch-layout input (N, C, L) -- used directly by the kernel (no transpose).
    x = jax.random.normal(k_x, (B, C, L), jnp.float32)

    # Effective conv weights after weight_norm at init ~ N(0, 0.01) (init_weights);
    # biases ~ U(-1/sqrt(fan_in), 1/sqrt(fan_in)) like nn.Conv1d default.
    w1 = 0.01 * jax.random.normal(k_w1, (3, C, C, KERNEL_SIZE), jnp.float32)
    w2 = 0.01 * jax.random.normal(k_w2, (3, C, C, KERNEL_SIZE), jnp.float32)
    bound = 1.0 / (C * KERNEL_SIZE) ** 0.5
    b1 = jax.random.uniform(k_b1, (3, C), jnp.float32, -bound, bound)
    b2 = jax.random.uniform(k_b2, (3, C), jnp.float32, -bound, bound)

    ref = resblock_ref(x, w1, b1, w2, b2)

    # fp32-matmul path (v5e-friendly; strict tolerance).
    out = jax.block_until_ready(
        resblock_forward(x, w1, b1, w2, b2, compute_dtype=jnp.float32))
    err = float(jnp.max(jnp.abs(out - ref)))
    assert err < 2e-3, f"fp32 path max abs error too large: {err}"

    # bf16-matmul path (v6e/v7x MXU-native; fp32 accumulation and elementwise).
    out_bf16 = jax.block_until_ready(
        resblock_forward(x, w1, b1, w2, b2, compute_dtype=jnp.bfloat16))
    err_bf16 = float(jnp.max(jnp.abs(out_bf16 - ref)))
    assert err_bf16 < 2e-2, f"bf16 path max abs error too large: {err_bf16}"

    print("KERNEL_OK")
</pallas_src>

<mosaic_0001>
module attributes {stable_mosaic.version = 11 : i64} {
  func.func @resblock_kernel(%arg0: i32, %arg1: memref<1x16x128xf32, #tpu.memory_space<vmem>>, %arg2: memref<3x16x48xf32, #tpu.memory_space<vmem>>, %arg3: memref<3x16x1xf32, #tpu.memory_space<vmem>>, %arg4: memref<3x16x48xf32, #tpu.memory_space<vmem>>, %arg5: memref<3x16x1xf32, #tpu.memory_space<vmem>>, %arg6: memref<1x16x128xf32, #tpu.memory_space<vmem>>) attributes {dimension_semantics = [#tpu.dimension_semantics<parallel>], iteration_bounds = array<i64: 2>, scalar_prefetch = 0 : i64, scratch_operands = 0 : i64, tpu.core_type = #tpu.core_type<tc>, window_params = [{transform_indices = @transform_0, window_bounds = array<i64: 1, 16, 128>}, {pipeline_mode = #tpu.pipeline_mode<synchronous>, transform_indices = @transform_1, window_bounds = array<i64: 3, 16, 48>}, {pipeline_mode = #tpu.pipeline_mode<synchronous>, transform_indices = @transform_2, window_bounds = array<i64: 3, 16, 1>}, {pipeline_mode = #tpu.pipeline_mode<synchronous>, transform_indices = @transform_3, window_bounds = array<i64: 3, 16, 48>}, {pipeline_mode = #tpu.pipeline_mode<synchronous>, transform_indices = @transform_4, window_bounds = array<i64: 3, 16, 1>}, {transform_indices = @transform_5, window_bounds = array<i64: 1, 16, 128>}]} {
    %c0 = arith.constant 0 : index
    %c0_0 = arith.constant 0 : index
    %c0_1 = arith.constant 0 : index
    %0 = vector.load %arg1[%c0, %c0_0, %c0_1] : memref<1x16x128xf32, #tpu.memory_space<vmem>>, vector<1x16x128xf32>
    %1 = vector.shape_cast %0 : vector<1x16x128xf32> to vector<16x128xf32>
    %cst = arith.constant 0.000000e+00 : f32
    %2 = vector.broadcast %cst : f32 to vector<16x128xf32>
    %cst_2 = arith.constant 0.000000e+00 : f32
    %3 = vector.broadcast %cst_2 : f32 to vector<16x128xf32>
    %4 = arith.cmpf oge, %1, %3 : vector<16x128xf32>
    %cst_3 = arith.constant 1.000000e-01 : f32
    %5 = vector.broadcast %cst_3 : f32 to vector<16x128xf32>
    %6 = arith.mulf %5, %1 : vector<16x128xf32>
    %7 = arith.select %4, %1, %6 : vector<16x128xi1>, vector<16x128xf32>
    %8 = tpu.concatenate %7, %2 in 1 : vector<16x128xf32>, vector<16x128xf32> -> vector<16x256xf32>
    %c1_i32 = arith.constant 1 : i32
    %9 = tpu.dynamic_rotate %8 by %c1_i32 dim 1 : vector<16x256xf32>, i32 -> vector<16x256xf32>
    %10 = vector.extract_strided_slice %9 {offsets = [0, 0], sizes = [16, 128], strides = [1, 1]} : vector<16x256xf32> to vector<16x128xf32>
    %c255_i32 = arith.constant 255 : i32
    %11 = tpu.dynamic_rotate %8 by %c255_i32 dim 1 : vector<16x256xf32>, i32 -> vector<16x256xf32>
    %12 = vector.extract_strided_slice %11 {offsets = [0, 0], sizes = [16, 128], strides = [1, 1]} : vector<16x256xf32> to vector<16x128xf32>
    %13 = tpu.concatenate %10, %7, %12 in 0 : vector<16x128xf32>, vector<16x128xf32>, vector<16x128xf32> -> vector<48x128xf32>
    %c0_4 = arith.constant 0 : index
    %c0_5 = arith.constant 0 : index
    %c0_6 = arith.constant 0 : index
    %14 = vector.load %arg2[%c0_4, %c0_5, %c0_6] : memref<3x16x48xf32, #tpu.memory_space<vmem>>, vector<1x16x48xf32>
    %15 = vector.shape_cast %14 : vector<1x16x48xf32> to vector<16x48xf32>
    %cst_7 = arith.constant dense<0.000000e+00> : vector<16x128xf32>
    %16 = tpu.matmul %15, %13, %cst_7 {dimension_numbers = #tpu.dot_dimension_numbers<[1], [0], [0], [1], [0, 0, 1, 1], [], []>} : vector<16x48xf32>, vector<48x128xf32>, vector<16x128xf32> -> vector<16x128xf32>
    %c0_8 = arith.constant 0 : index
    %c0_9 = arith.constant 0 : index
    %c0_10 = arith.constant 0 : index
    %17 = vector.load %arg3[%c0_8, %c0_9, %c0_10] : memref<3x16x1xf32, #tpu.memory_space<vmem>>, vector<1x16x1xf32>
    %18 = vector.shape_cast %17 : vector<1x16x1xf32> to vector<16x1xf32>
    %19 = vector.broadcast %18 : vector<16x1xf32> to vector<16x128xf32>
    %20 = arith.addf %16, %19 : vector<16x128xf32>
    %cst_11 = arith.constant 0.000000e+00 : f32
    %21 = vector.broadcast %cst_11 : f32 to vector<16x128xf32>
    %22 = arith.cmpf oge, %20, %21 : vector<16x128xf32>
    %cst_12 = arith.constant 1.000000e-01 : f32
    %23 = vector.broadcast %cst_12 : f32 to vector<16x128xf32>
    %24 = arith.mulf %23, %20 : vector<16x128xf32>
    %25 = arith.select %22, %20, %24 : vector<16x128xi1>, vector<16x128xf32>
    %26 = tpu.concatenate %25, %2 in 1 : vector<16x128xf32>, vector<16x128xf32> -> vector<16x256xf32>
    %c1_i32_13 = arith.constant 1 : i32
    %27 = tpu.dynamic_rotate %26 by %c1_i32_13 dim 1 : vector<16x256xf32>, i32 -> vector<16x256xf32>
    %28 = vector.extract_strided_slice %27 {offsets = [0, 0], sizes = [16, 128], strides = [1, 1]} : vector<16x256xf32> to vector<16x128xf32>
    %c255_i32_14 = arith.constant 255 : i32
    %29 = tpu.dynamic_rotate %26 by %c255_i32_14 dim 1 : vector<16x256xf32>, i32 -> vector<16x256xf32>
    %30 = vector.extract_strided_slice %29 {offsets = [0, 0], sizes = [16, 128], strides = [1, 1]} : vector<16x256xf32> to vector<16x128xf32>
    %31 = tpu.concatenate %28, %25, %30 in 0 : vector<16x128xf32>, vector<16x128xf32>, vector<16x128xf32> -> vector<48x128xf32>
    %c0_15 = arith.constant 0 : index
    %c0_16 = arith.constant 0 : index
    %c0_17 = arith.constant 0 : index
    %32 = vector.load %arg4[%c0_15, %c0_16, %c0_17] : memref<3x16x48xf32, #tpu.memory_space<vmem>>, vector<1x16x48xf32>
    %33 = vector.shape_cast %32 : vector<1x16x48xf32> to vector<16x48xf32>
    %cst_18 = arith.constant dense<0.000000e+00> : vector<16x128xf32>
    %34 = tpu.matmul %33, %31, %cst_18 {dimension_numbers = #tpu.dot_dimension_numbers<[1], [0], [0], [1], [0, 0, 1, 1], [], []>} : vector<16x48xf32>, vector<48x128xf32>, vector<16x128xf32> -> vector<16x128xf32>
    %c0_19 = arith.constant 0 : index
    %c0_20 = arith.constant 0 : index
    %c0_21 = arith.constant 0 : index
    %35 = vector.load %arg5[%c0_19, %c0_20, %c0_21] : memref<3x16x1xf32, #tpu.memory_space<vmem>>, vector<1x16x1xf32>
    %36 = vector.shape_cast %35 : vector<1x16x1xf32> to vector<16x1xf32>
    %37 = vector.broadcast %36 : vector<16x1xf32> to vector<16x128xf32>
    %38 = arith.addf %34, %37 : vector<16x128xf32>
    %39 = arith.addf %38, %1 : vector<16x128xf32>
    %cst_22 = arith.constant 0.000000e+00 : f32
    %40 = vector.broadcast %cst_22 : f32 to vector<16x128xf32>
    %41 = arith.cmpf oge, %39, %40 : vector<16x128xf32>
    %cst_23 = arith.constant 1.000000e-01 : f32
    %42 = vector.broadcast %cst_23 : f32 to vector<16x128xf32>
    %43 = arith.mulf %42, %39 : vector<16x128xf32>
    %44 = arith.select %41, %39, %43 : vector<16x128xi1>, vector<16x128xf32>
    %45 = tpu.concatenate %44, %2 in 1 : vector<16x128xf32>, vector<16x128xf32> -> vector<16x256xf32>
    %c3_i32 = arith.constant 3 : i32
    %46 = tpu.dynamic_rotate %45 by %c3_i32 dim 1 : vector<16x256xf32>, i32 -> vector<16x256xf32>
    %47 = vector.extract_strided_slice %46 {offsets = [0, 0], sizes = [16, 128], strides = [1, 1]} : vector<16x256xf32> to vector<16x128xf32>
    %c253_i32 = arith.constant 253 : i32
    %48 = tpu.dynamic_rotate %45 by %c253_i32 dim 1 : vector<16x256xf32>, i32 -> vector<16x256xf32>
    %49 = vector.extract_strided_slice %48 {offsets = [0, 0], sizes = [16, 128], strides = [1, 1]} : vector<16x256xf32> to vector<16x128xf32>
    %50 = tpu.concatenate %47, %44, %49 in 0 : vector<16x128xf32>, vector<16x128xf32>, vector<16x128xf32> -> vector<48x128xf32>
    %c1 = arith.constant 1 : index
    %c0_24 = arith.constant 0 : index
    %c0_25 = arith.constant 0 : index
    %51 = vector.load %arg2[%c1, %c0_24, %c0_25] : memref<3x16x48xf32, #tpu.memory_space<vmem>>, vector<1x16x48xf32>
    %52 = vector.shape_cast %51 : vector<1x16x48xf32> to vector<16x48xf32>
    %cst_26 = arith.constant dense<0.000000e+00> : vector<16x128xf32>
    %53 = tpu.matmul %52, %50, %cst_26 {dimension_numbers = #tpu.dot_dimension_numbers<[1], [0], [0], [1], [0, 0, 1, 1], [], []>} : vector<16x48xf32>, vector<48x128xf32>, vector<16x128xf32> -> vector<16x128xf32>
    %c1_27 = arith.constant 1 : index
    %c0_28 = arith.constant 0 : index
    %c0_29 = arith.constant 0 : index
    %54 = vector.load %arg3[%c1_27, %c0_28, %c0_29] : memref<3x16x1xf32, #tpu.memory_space<vmem>>, vector<1x16x1xf32>
    %55 = vector.shape_cast %54 : vector<1x16x1xf32> to vector<16x1xf32>
    %56 = vector.broadcast %55 : vector<16x1xf32> to vector<16x128xf32>
    %57 = arith.addf %53, %56 : vector<16x128xf32>
    %cst_30 = arith.constant 0.000000e+00 : f32
    %58 = vector.broadcast %cst_30 : f32 to vector<16x128xf32>
    %59 = arith.cmpf oge, %57, %58 : vector<16x128xf32>
    %cst_31 = arith.constant 1.000000e-01 : f32
    %60 = vector.broadcast %cst_31 : f32 to vector<16x128xf32>
    %61 = arith.mulf %60, %57 : vector<16x128xf32>
    %62 = arith.select %59, %57, %61 : vector<16x128xi1>, vector<16x128xf32>
    %63 = tpu.concatenate %62, %2 in 1 : vector<16x128xf32>, vector<16x128xf32> -> vector<16x256xf32>
    %c1_i32_32 = arith.constant 1 : i32
    %64 = tpu.dynamic_rotate %63 by %c1_i32_32 dim 1 : vector<16x256xf32>, i32 -> vector<16x256xf32>
    %65 = vector.extract_strided_slice %64 {offsets = [0, 0], sizes = [16, 128], strides = [1, 1]} : vector<16x256xf32> to vector<16x128xf32>
    %c255_i32_33 = arith.constant 255 : i32
    %66 = tpu.dynamic_rotate %63 by %c255_i32_33 dim 1 : vector<16x256xf32>, i32 -> vector<16x256xf32>
    %67 = vector.extract_strided_slice %66 {offsets = [0, 0], sizes = [16, 128], strides = [1, 1]} : vector<16x256xf32> to vector<16x128xf32>
    %68 = tpu.concatenate %65, %62, %67 in 0 : vector<16x128xf32>, vector<16x128xf32>, vector<16x128xf32> -> vector<48x128xf32>
    %c1_34 = arith.constant 1 : index
    %c0_35 = arith.constant 0 : index
    %c0_36 = arith.constant 0 : index
    %69 = vector.load %arg4[%c1_34, %c0_35, %c0_36] : memref<3x16x48xf32, #tpu.memory_space<vmem>>, vector<1x16x48xf32>
    %70 = vector.shape_cast %69 : vector<1x16x48xf32> to vector<16x48xf32>
    %cst_37 = arith.constant dense<0.000000e+00> : vector<16x128xf32>
    %71 = tpu.matmul %70, %68, %cst_37 {dimension_numbers = #tpu.dot_dimension_numbers<[1], [0], [0], [1], [0, 0, 1, 1], [], []>} : vector<16x48xf32>, vector<48x128xf32>, vector<16x128xf32> -> vector<16x128xf32>
    %c1_38 = arith.constant 1 : index
    %c0_39 = arith.constant 0 : index
    %c0_40 = arith.constant 0 : index
    %72 = vector.load %arg5[%c1_38, %c0_39, %c0_40] : memref<3x16x1xf32, #tpu.memory_space<vmem>>, vector<1x16x1xf32>
    %73 = vector.shape_cast %72 : vector<1x16x1xf32> to vector<16x1xf32>
    %74 = vector.broadcast %73 : vector<16x1xf32> to vector<16x128xf32>
    %75 = arith.addf %71, %74 : vector<16x128xf32>
    %76 = arith.addf %75, %39 : vector<16x128xf32>
    %cst_41 = arith.constant 0.000000e+00 : f32
    %77 = vector.broadcast %cst_41 : f32 to vector<16x128xf32>
    %78 = arith.cmpf oge, %76, %77 : vector<16x128xf32>
    %cst_42 = arith.constant 1.000000e-01 : f32
    %79 = vector.broadcast %cst_42 : f32 to vector<16x128xf32>
    %80 = arith.mulf %79, %76 : vector<16x128xf32>
    %81 = arith.select %78, %76, %80 : vector<16x128xi1>, vector<16x128xf32>
    %82 = tpu.concatenate %81, %2 in 1 : vector<16x128xf32>, vector<16x128xf32> -> vector<16x256xf32>
    %c5_i32 = arith.constant 5 : i32
    %83 = tpu.dynamic_rotate %82 by %c5_i32 dim 1 : vector<16x256xf32>, i32 -> vector<16x256xf32>
    %84 = vector.extract_strided_slice %83 {offsets = [0, 0], sizes = [16, 128], strides = [1, 1]} : vector<16x256xf32> to vector<16x128xf32>
    %c251_i32 = arith.constant 251 : i32
    %85 = tpu.dynamic_rotate %82 by %c251_i32 dim 1 : vector<16x256xf32>, i32 -> vector<16x256xf32>
    %86 = vector.extract_strided_slice %85 {offsets = [0, 0], sizes = [16, 128], strides = [1, 1]} : vector<16x256xf32> to vector<16x128xf32>
    %87 = tpu.concatenate %84, %81, %86 in 0 : vector<16x128xf32>, vector<16x128xf32>, vector<16x128xf32> -> vector<48x128xf32>
    %c2 = arith.constant 2 : index
    %c0_43 = arith.constant 0 : index
    %c0_44 = arith.constant 0 : index
    %88 = vector.load %arg2[%c2, %c0_43, %c0_44] : memref<3x16x48xf32, #tpu.memory_space<vmem>>, vector<1x16x48xf32>
    %89 = vector.shape_cast %88 : vector<1x16x48xf32> to vector<16x48xf32>
    %cst_45 = arith.constant dense<0.000000e+00> : vector<16x128xf32>
    %90 = tpu.matmul %89, %87, %cst_45 {dimension_numbers = #tpu.dot_dimension_numbers<[1], [0], [0], [1], [0, 0, 1, 1], [], []>} : vector<16x48xf32>, vector<48x128xf32>, vector<16x128xf32> -> vector<16x128xf32>
    %c2_46 = arith.constant 2 : index
    %c0_47 = arith.constant 0 : index
    %c0_48 = arith.constant 0 : index
    %91 = vector.load %arg3[%c2_46, %c0_47, %c0_48] : memref<3x16x1xf32, #tpu.memory_space<vmem>>, vector<1x16x1xf32>
    %92 = vector.shape_cast %91 : vector<1x16x1xf32> to vector<16x1xf32>
    %93 = vector.broadcast %92 : vector<16x1xf32> to vector<16x128xf32>
    %94 = arith.addf %90, %93 : vector<16x128xf32>
    %cst_49 = arith.constant 0.000000e+00 : f32
    %95 = vector.broadcast %cst_49 : f32 to vector<16x128xf32>
    %96 = arith.cmpf oge, %94, %95 : vector<16x128xf32>
    %cst_50 = arith.constant 1.000000e-01 : f32
    %97 = vector.broadcast %cst_50 : f32 to vector<16x128xf32>
    %98 = arith.mulf %97, %94 : vector<16x128xf32>
    %99 = arith.select %96, %94, %98 : vector<16x128xi1>, vector<16x128xf32>
    %100 = tpu.concatenate %99, %2 in 1 : vector<16x128xf32>, vector<16x128xf32> -> vector<16x256xf32>
    %c1_i32_51 = arith.constant 1 : i32
    %101 = tpu.dynamic_rotate %100 by %c1_i32_51 dim 1 : vector<16x256xf32>, i32 -> vector<16x256xf32>
    %102 = vector.extract_strided_slice %101 {offsets = [0, 0], sizes = [16, 128], strides = [1, 1]} : vector<16x256xf32> to vector<16x128xf32>
    %c255_i32_52 = arith.constant 255 : i32
    %103 = tpu.dynamic_rotate %100 by %c255_i32_52 dim 1 : vector<16x256xf32>, i32 -> vector<16x256xf32>
    %104 = vector.extract_strided_slice %103 {offsets = [0, 0], sizes = [16, 128], strides = [1, 1]} : vector<16x256xf32> to vector<16x128xf32>
    %105 = tpu.concatenate %102, %99, %104 in 0 : vector<16x128xf32>, vector<16x128xf32>, vector<16x128xf32> -> vector<48x128xf32>
    %c2_53 = arith.constant 2 : index
    %c0_54 = arith.constant 0 : index
    %c0_55 = arith.constant 0 : index
    %106 = vector.load %arg4[%c2_53, %c0_54, %c0_55] : memref<3x16x48xf32, #tpu.memory_space<vmem>>, vector<1x16x48xf32>
    %107 = vector.shape_cast %106 : vector<1x16x48xf32> to vector<16x48xf32>
    %cst_56 = arith.constant dense<0.000000e+00> : vector<16x128xf32>
    %108 = tpu.matmul %107, %105, %cst_56 {dimension_numbers = #tpu.dot_dimension_numbers<[1], [0], [0], [1], [0, 0, 1, 1], [], []>} : vector<16x48xf32>, vector<48x128xf32>, vector<16x128xf32> -> vector<16x128xf32>
    %c2_57 = arith.constant 2 : index
    %c0_58 = arith.constant 0 : index
    %c0_59 = arith.constant 0 : index
    %109 = vector.load %arg5[%c2_57, %c0_58, %c0_59] : memref<3x16x1xf32, #tpu.memory_space<vmem>>, vector<1x16x1xf32>
    %110 = vector.shape_cast %109 : vector<1x16x1xf32> to vector<16x1xf32>
    %111 = vector.broadcast %110 : vector<16x1xf32> to vector<16x128xf32>
    %112 = arith.addf %108, %111 : vector<16x128xf32>
    %113 = arith.addf %112, %76 : vector<16x128xf32>
    %c0_60 = arith.constant 0 : index
    %c0_61 = arith.constant 0 : index
    %c0_62 = arith.constant 0 : index
    %114 = vector.load %arg6[%c0_60, %c0_61, %c0_62] : memref<1x16x128xf32, #tpu.memory_space<vmem>>, vector<1x16x128xf32>
    %115 = vector.shape_cast %114 : vector<1x16x128xf32> to vector<16x128xf32>
    %116 = vector.shape_cast %113 : vector<16x128xf32> to vector<1x16x128xf32>
    tpu.vector_store %arg6[%c0_60, %c0_61, %c0_62], %116 {strides = array<i32>} : memref<1x16x128xf32, #tpu.memory_space<vmem>>, vector<1x16x128xf32>,
    return
  }
  func.func @transform_0(%arg0: i32) -> (i32, i32, i32) {
    %c0_i32 = arith.constant 0 : i32
    %c0_i32_0 = arith.constant 0 : i32
    %c0_i32_1 = arith.constant 0 : i32
    return %arg0, %c0_i32, %c0_i32_0 : i32, i32, i32
  }
  func.func @transform_1(%arg0: i32) -> (i32, i32, i32) {
    %c0_i32 = arith.constant 0 : i32
    %c0_i32_0 = arith.constant 0 : i32
    %c0_i32_1 = arith.constant 0 : i32
    %c0_i32_2 = arith.constant 0 : i32
    return %c0_i32, %c0_i32_0, %c0_i32_1 : i32, i32, i32
  }
  func.func @transform_2(%arg0: i32) -> (i32, i32, i32) {
    %c0_i32 = arith.constant 0 : i32
    %c0_i32_0 = arith.constant 0 : i32
    %c0_i32_1 = arith.constant 0 : i32
    %c0_i32_2 = arith.constant 0 : i32
    return %c0_i32, %c0_i32_0, %c0_i32_1 : i32, i32, i32
  }
  func.func @transform_3(%arg0: i32) -> (i32, i32, i32) {
    %c0_i32 = arith.constant 0 : i32
    %c0_i32_0 = arith.constant 0 : i32
    %c0_i32_1 = arith.constant 0 : i32
    %c0_i32_2 = arith.constant 0 : i32
    return %c0_i32, %c0_i32_0, %c0_i32_1 : i32, i32, i32
  }
  func.func @transform_4(%arg0: i32) -> (i32, i32, i32) {
    %c0_i32 = arith.constant 0 : i32
    %c0_i32_0 = arith.constant 0 : i32
    %c0_i32_1 = arith.constant 0 : i32
    %c0_i32_2 = arith.constant 0 : i32
    return %c0_i32, %c0_i32_0, %c0_i32_1 : i32, i32, i32
  }
  func.func @transform_5(%arg0: i32) -> (i32, i32, i32) {
    %c0_i32 = arith.constant 0 : i32
    %c0_i32_0 = arith.constant 0 : i32
    %c0_i32_1 = arith.constant 0 : i32
    return %arg0, %c0_i32, %c0_i32_0 : i32, i32, i32
  }
}

</mosaic_0001>

<bundles_post_ra>
// kernel: tpu_custom_call.1
= control target key start
LH: loop header
LB: loop body
LE: loop exit
PB: predicated region body
PF: predicated region fallthrough
CT: control target
= control target key end

     0   :  { %10 = vsyncpa [#allocation3], 0  ;;  %s1789_s0 = inlined_call_operand.hbm [shape: f32[2,16,128], index: 0, kind: input, shape index: {}]   ;;  %s1790_s1 = inlined_call_operand.vmem [shape: f32[3,16,48], index: 1, kind: input, shape index: {}]   ;;  %s1791_s2 = inlined_call_operand.vmem [shape: f32[3,16,1], index: 2, kind: input, shape index: {}]   ;;  %s1792_s3 = inlined_call_operand.vmem [shape: f32[3,16,48], index: 3, kind: input, shape index: {}]   ;;  %s1793_s4 = inlined_call_operand.vmem [shape: f32[3,16,1], index: 4, kind: input, shape index: {}]   ;;  %s1794_s5 = inlined_call_operand.hbm [shape: f32[2,16,128], index: 5, kind: output, shape index: {}]  }
   0x1   :  { %12 = vsyncpa [#allocation3 + $0x1], 0 }
   0x2   :  { %13 = vsyncpa [#allocation4], 0 }
   0x3   :  { %15 = vsyncpa [#allocation4 + $0x1], 0  ;;  %s1427_s18 = smov 0   ;;  %s1429_s19 = smov 0  }
   0x4   :  { %s1431_s20 = smov 0   ;;  %s1433_s21 = smov 0  }
   0x5 LB: > { %s1448_s22 = sadd.s32 4294967295, %s1381_s21   ;;  %s1047_s23 = sadd.s32 4294967294, %s1381_s21   ;;  %s1381_s21 = sphi %s1433_s21, %s1809_s21   ;;  %s1377_s20 = sphi %s1431_s20, %s1808_s20   ;;  %s1373_s19 = sphi %s1429_s19, %s1807_s19   ;;  %s1369_s18 = sphi %s1427_s18, %s1806_s18  }
   0x6   : > { %s1452_s24 = sadd.s32 1, %s1381_s21   ;;  %s28_s25 = sadd.s32 1, %s1377_s20 }
   0x7   : > { %s25_s26 = ssub.s32 %s1381_s21, %s1452_s24  ;;  %p35_p0 = scmp.ne.s32.totalorder %s1377_s20, %s1373_s19 }
   0x8   : > { %p26_p1 = scmp.eq.s32.totalorder %s25_s26, 0  ;;  %p36_p2 = scmp.eq.s32.totalorder %s1381_s21, 0 }
   0x9   : > { %p41_p3 = scmp.ne.s32.totalorder %s1373_s19, %s1369_s18  ;;  %p42_p4 = scmp.eq.s32.totalorder %s1448_s22, 0 }
   0xa   : > { %s1464_s27 = scalar_select %p26_p1, %s1377_s20, %s28_s25  }
   0xb   : > { %p1466_p5 = por %p36_p2, %p35_p0  ;;  %p1470_p6 = por %p42_p4, %p41_p3 }
   0xc   : > { %p149_p7 = scmp.eq.s32.totalorder %s1448_s22, 1  ;;  %p155_p8 = scmp.eq.s32.totalorder %s1047_s23, 1 }
   0xd   : > { %s1798_s29 = scalar_select %p1470_p6, 1, 0 }
   0xe   : > { %p1241_p10 = scmp.lt.s32.totalorder %s1381_s21, 2  ;;  %p1477_p11 = por %p149_p7, %p35_p0 }
   0xf   : > { %p1481_p12 = por %p155_p8, %p41_p3  ;;  %s187_s7 = sand.u32 1, %s1377_s20  }
  0x10   : > { %s1799_s30 = scalar_select %p1477_p11, 1, 0 }
  0x11   : > { %s1800_s6 = scalar_select %p1481_p12, 1, 0 }
  0x12   : > { %s1089_s8 = sshll.u32 %s1381_s21, 8  ;;  %s1050_s9 = sshll.u32 %s187_s7, 4 }
  0x13   : > { %s1490_s12 = scalar_lea.hbm %s1789_s0, %s1089_s8  ;;  %s191_s13 = scalar_lea.vmem [#allocation2], %s1050_s9 }
  0x14   : > { %s198_s14 = sshll.u32 %s191_s13, 4  ;;  %p1494_p13 = pnand %p1241_p10, %p1466_p5  ;;  %s1498_s14 = int_to_ptr.vmem [resolvable:$true] %s198_s14 }
  0x15   : > { %s1500_s16 = scalar_lea.sflag [#allocation3], %s187_s7  ;;  %s1289_s17 = scalar_lea.hbm %s1490_s12, 256 }
  0x16   : > { %p1290_p0 = scmp.ne.s32.totalorder %s1490_s12, %s1289_s17  ;;  %p1291_p1 = pneg %p1494_p13 }
  0x17   : > { %s1294_s26 = scalar_lea.hbm %s1789_s0, 512  ;;  %p1295_p4 = scmp.lt.s32.totalorder %s1490_s12, %s1789_s0 }
  0x18   : > { %p1292_p2 = pnand %p1291_p1, %p1290_p0  ;;  %p1296_p5 = scmp.lt.s32.totalorder %s1294_s26, %s1289_s17 }
  0x1a   : > { %p1293_p3 = pneg %p1292_p2  ;;  %p1297_p7 = por %p1296_p5, %p1295_p4 }
  0x1c   : > { %p1298_p8 = pnand %p1297_p7, %p1293_p3 }
  0x1e   : > { %1301 = shalt.err (!%p1298_p8)
}
  0x1f   : > { %s1302_s7 = scalar_lea.vmem %s1498_s14, 256  ;;  %s1383_s9 = smov [#allocation2]  }
  0x20   : > { %p1303_p10 = scmp.ne.s32.totalorder %s1498_s14, %s1302_s7  ;;  %s1307_s10 = sshll.u32 %s1383_s9, 4  ;;  %s1308_s10 = int_to_ptr.vmem [resolvable:$false] %s1307_s10 }
  0x21   : > { %s1309_s11 = scalar_lea.vmem %s1308_s10, 512  ;;  %p1310_p2 = scmp.lt.s32.totalorder %s1498_s14, %s1308_s10 }
  0x22   : > { %p1305_p9 = pnand %p1303_p10, %p1291_p1  ;;  %p1311_p12 = scmp.lt.s32.totalorder %s1309_s11, %s1302_s7 }
  0x24   : > { %p1306_p0 = pneg %p1305_p9  ;;  %p1312_p11 = por %p1311_p12, %p1310_p2 }
  0x26   : > { %p1313_p6 = pnand %p1312_p11, %p1306_p0 }
  0x28   : > { %1316 = shalt.err (!%p1313_p6)
}
  0x29   : > { %s1384_s13 = smov 128   ;;  %s1385_s17 = smov 8  }
  0x2a   : > { %1236 = dma.hbm_to_vmem [thread:$0]  (!%p1494_p13), %s1490_s12, 256, %s1498_s14, %s1500_s16, %s1384_s13, %s1384_s13, %s1385_s17  }
  0x2b   : > { %p1053_p9 = scmp.ge.s32.totalorder %s1381_s21, 1  ;;  %p206_p1 = scmp.lt.s32.totalorder %s1381_s21, 3 }
  0x2d   : > { %p207_p3 = pnand %p1053_p9, %p206_p1 }
  0x2e   : > { %s1524_s23 = sand.u32 (!%p207_p3), 1, %s1373_s19   ;;  %p1802_p6 = scmp.ne.s32.totalorder (!%p207_p3), %s1798_s29, 0 }
  0x2f   : > { %210 = sbr.rel (%p207_p3) target bundleno = 2040 (0x7f8), region = 40  ;;  %s1054_s25 = sshll.u32 (!%p207_p3), %s1524_s23, 4 }
  0x30   : > { %s213_s26 = scalar_lea.sflag (!%p207_p3), [#allocation3], %s1524_s23  ;;  %s216_s28 = scalar_lea.vmem (!%p207_p3), [#allocation2], %s1054_s25 }
  0x34   : > { %1360 = dma.done.wait (%p1802_p6), %s213_s26, 256  }
  0x35   : > { %1362 = vsyncadd (%p1802_p6), %s213_s26, 4294967040  ;;  %v1534_v0 = vld [vmem:[%s216_s28 + $0x8] sm:$0xff]  ;;  %v1536_v1 = vld [vmem:[%s216_s28] sm:$0xff]  ;;  %s1386_s12 = smov 127   ;;  %vm285_vm2 = vcmask 392192   ;;  %v1387_v7 = vmov 0.0   ;;  %v257_v11 = vlaneseq }
  0x36   : > { %vm246_vm0 = vcmp.ge.f32.partialorder %v1534_v0, 0.0  ;;  %v248_v2 = vmul.f32 0.1, %v1534_v0  ;;  %vm245_vm1 = vcmp.ge.f32.partialorder %v1536_v1, 0.0  ;;  %v247_v3 = vmul.f32 0.1, %v1536_v1 }
  0x37   : > { %v271_v6 = vld [vmem:[%s1790_s1] sm:$0xff]  ;;  %s1388_s15 = smov 1   ;;  %v1389_v8 = vmov 0   ;;  %v274_v9 = vld [vmem:[%s1791_s2 + $0x8] sm:$0xff]  ;;  %v1562_v12 = vand.u32 127, %v257_v11  ;;  %s1390_s7 = smov 125  }
  0x38   : > { %v250_v4 = vsel %vm246_vm0, %v1534_v0, %v248_v2  ;;  %v249_v5 = vsel %vm245_vm1, %v1536_v1, %v247_v3  ;;  %1151 = vmatprep.mubr.msk.f32.mxu0 %vm285_vm2, %v271_v6  ;;  %1287 = vset.pattern.permute.xlu0 %v1389_v8  ;;  %v273_v10 = vld [vmem:[%s1791_s2] sm:$0xff]  ;;  %v272_v23 = vld [vmem:[%s1790_s1 + $0x8] sm:$0xff]  ;;  %s1391_s9 = smov 3   ;;  %v1060_v57 = vld [vmem:[%s1790_s1 + $0x10] sm:$0xff]  ;;  %s1392_s26 = smov 123  }
  0x39   : > { %264 = vrot.lane.b32.xlu0 %v250_v4, %s1386_s12  ;;  %262 = vrot.lane.b32.xlu1 %v249_v5, %s1386_s12  ;;  %vm268_vm3 = vcmp.lt.s32.totalorder %v1562_v12, 127  ;;  %vm259_vm4 = vcmp.lt.s32.totalorder %v1562_v12, 1  ;;  %v385_v31 = vld [vmem:[%s1792_s3] sm:$0xff]  ;;  %v388_v35 = vld [vmem:[%s1793_s4 + $0x8] sm:$0xff]  ;;  %vm503_vm9 = vcmp.lt.s32.totalorder %v1562_v12, 125  ;;  %vm494_vm10 = vcmp.lt.s32.totalorder %v1562_v12, 3 }
  0x3a   : > { %1288 = vset.pattern.permute.xlu1 %v1389_v8  ;;  %1166 = vmatprep.mubr.msk.f32.mxu1 %vm285_vm2, %v385_v31  ;;  %v387_v36 = vld [vmem:[%s1793_s4] sm:$0xff]  ;;  %v386_v45 = vld [vmem:[%s1792_s3 + $0x8] sm:$0xff]  ;;  %v1062_v59 = vld [vmem:[%s1791_s2 + $0x10] sm:$0xff]  ;;  %s1393_s28 = smov 5   ;;  %vm741_vm15 = vcmp.lt.s32.totalorder %v1562_v12, 123  ;;  %vm732_vm0 = vcmp.lt.s32.totalorder %v1562_v12, 5 }
  0x3b   : > { %v1063_v60 = vld [vmem:[%s1791_s2 + $0x18] sm:$0xff]  ;;  %s242_s16 = scalar_lea.vmem [#allocation5], %s1054_s25  ;;  %p1803_p12 = scmp.ne.s32.totalorder %s1799_s30, 0 }
  0x3c   : > { %v1061_v8 = vld [vmem:[%s1790_s1 + $0x18] sm:$0xff]  ;;  %s974_s8 = sshll.u32 %s242_s16, 4  ;;  %s1394_s13 = smov [#allocation5]   ;;  %s1740_s8 = int_to_ptr.vmem [resolvable:$true] %s974_s8 }
  0x3d   : > { %266 = vrot.lane.b32.xlu0 %v1387_v7, %s1386_s12  ;;  %253 = vrot.lane.b32.xlu1 %v250_v4, %s1388_s15  ;;  %s1317_s25 = scalar_lea.vmem %s1740_s8, 256  ;;  %s1321_s17 = sshll.u32 %s1394_s13, 4  ;;  %s1322_s17 = int_to_ptr.vmem [resolvable:$false] %s1321_s17 }
  0x3e   : > { %p1318_p11 = scmp.ne.s32.totalorder %s1740_s8, %s1317_s25  ;;  %p1324_p5 = scmp.lt.s32.totalorder %s1740_s8, %s1322_s17 }
  0x40   : > { %p1319_p13 = pnand %p1318_p11, %p1803_p12 }
  0x41   : > { %255 = vrot.lane.b32.xlu0 %v1387_v7, %s1388_s15  ;;  %251 = vrot.lane.b32.xlu1 %v249_v5, %s1388_s15 }
  0x42   : > { %p1320_p4 = pneg %p1319_p13 }
  0x45   : > { %282 = vperm.xlu0 %1287, %v274_v9   ;;  %277 = vperm.xlu1 %1288, %v273_v10  }
  0xab   : > { %v265_v13 = vpop.permute.xlu0 %264  ;;  %v263_v14 = vpop.permute.xlu1 %262 }
  0xaf   : > { %v1565_v15 = vpop.permute.xlu0 %266  ;;  %v254_v17 = vpop.permute.xlu1 %253 }
  0xb0   : > { %v270_v16 = vsel %vm268_vm3, %v265_v13, %v1565_v15  ;;  %v269_v18 = vsel %vm268_vm3, %v263_v14, %v1565_v15 }
  0xb1   : > { %1139 = vmatprep.subr.mxu0 %v270_v16 }
  0xb2   : > { %1140 = vmatpush3.msra.mxu0 %v270_v16 }
  0xb3   : > { %1141 = vmatprep.subr.mxu0 %v269_v18  ;;  %v1573_v19 = vpop.permute.xlu0 %255  ;;  %v252_v20 = vpop.permute.xlu1 %251 }
  0xb4   : > { %1142 = vmatpush3.msra.mxu0 %v269_v18  ;;  %v261_v21 = vsel %vm259_vm4, %v1573_v19, %v254_v17  ;;  %v260_v22 = vsel %vm259_vm4, %v1573_v19, %v252_v20  ;;  %v1066_v18 = vld [vmem:[%s1792_s3 + $0x10] sm:$0xff] }
  0xb5   : > { %1143 = vmatprep.subr.mxu0 %v250_v4 }
  0xb6   : > { %1144 = vmatpush3.msra.mxu0 %v250_v4 }
  0xb7   : > { %1145 = vmatprep.subr.mxu0 %v249_v5 }
  0xb8   : > { %1146 = vmatpush3.msra.mxu0 %v249_v5 }
  0xb9   : > { %1147 = vmatprep.subr.mxu0 %v261_v21 }
  0xba   : > { %1148 = vmatpush3.msra.mxu0 %v261_v21 }
  0xbb   : > { %1149 = vmatprep.subr.mxu0 %v260_v22 }
  0xbc   : > { %1150 = vmatpush3.msra.mxu0 %v260_v22 }
  0xbd   : > { %1152 = vmatmul.mubr.msk.f32.vlgmr.msra.gmra.mxu0 %vm285_vm2, %v272_v23  ;;  %v1069_v23 = vld [vmem:[%s1793_s4 + $0x18] sm:$0xff] }
  0xbe   : > { %1181 = vmatprep.mubr.msk.f32.mxu0 %vm285_vm2, %v1060_v57 }
  0xc0   : > { %v283_v24 = vpop.permute.xlu0 %282  ;;  %v278_v26 = vpop.permute.xlu1 %277 }
 0x17d   : > { %v1153_v25 = vpop.f32.mrf.mxu0 }
 0x17e   : > { %v364_v27 = vadd.f32 %v1153_v25, %v283_v24  ;;  %v1068_v24 = vld [vmem:[%s1793_s4 + $0x10] sm:$0xff] }
 0x17f   : > { %v358_v28 = vpop.f32.mrf.mxu0 }
 0x180   : > { %vm368_vm5 = vcmp.ge.f32.partialorder %v364_v27, 0.0  ;;  %v370_v29 = vmul.f32 0.1, %v364_v27  ;;  %v359_v30 = vadd.f32 %v358_v28, %v278_v26 }
 0x182   : > { %vm367_vm6 = vcmp.ge.f32.partialorder %v359_v30, 0.0  ;;  %v369_v32 = vmul.f32 0.1, %v359_v30  ;;  %v372_v33 = vsel %vm368_vm5, %v364_v27, %v370_v29 }
 0x183   : > { %381 = vrot.lane.b32.xlu1 %v372_v33, %s1386_s12 }
 0x184   : > { %v371_v34 = vsel %vm367_vm6, %v359_v30, %v369_v32 }
 0x185   : > { %379 = vrot.lane.b32.xlu0 %v371_v34, %s1386_s12 }
 0x187   : > { %375 = vrot.lane.b32.xlu1 %v372_v33, %s1388_s15 }
 0x189   : > { %373 = vrot.lane.b32.xlu0 %v371_v34, %s1388_s15 }
 0x18b   : > { %396 = vperm.xlu1 %1288, %v388_v35  }
 0x18d   : > { %391 = vperm.xlu0 %1287, %v387_v36  }
 0x191   : > { %501 = vrot.lane.b32.xlu0 %v1387_v7, %s1390_s7 }
 0x1f5   : > { %v382_v37 = vpop.permute.xlu1 %381 }
 0x1f6   : > { %v384_v38 = vsel %vm268_vm3, %v382_v37, %v1565_v15 }
 0x1f7   : > { %v380_v39 = vpop.permute.xlu0 %379  ;;  %1154 = vmatprep.subr.mxu1 %v384_v38 }
 0x1f8   : > { %1155 = vmatpush3.msra.mxu1 %v384_v38  ;;  %v383_v40 = vsel %vm268_vm3, %v380_v39, %v1565_v15 }
 0x1f9   : > { %1156 = vmatprep.subr.mxu1 %v383_v40  ;;  %v376_v41 = vpop.permute.xlu1 %375 }
 0x1fa   : > { %1157 = vmatpush3.msra.mxu1 %v383_v40  ;;  %v378_v43 = vsel %vm259_vm4, %v1573_v19, %v376_v41 }
 0x1fb   : > { %1158 = vmatprep.subr.mxu1 %v372_v33  ;;  %v374_v42 = vpop.permute.xlu0 %373 }
 0x1fc   : > { %1159 = vmatpush3.msra.mxu1 %v372_v33  ;;  %v377_v44 = vsel %vm259_vm4, %v1573_v19, %v374_v42  ;;  %v1067_v33 = vld [vmem:[%s1792_s3 + $0x18] sm:$0xff] }
 0x1fd   : > { %1160 = vmatprep.subr.mxu1 %v371_v34 }
 0x1fe   : > { %1161 = vmatpush3.msra.mxu1 %v371_v34 }
 0x1ff   : > { %1162 = vmatprep.subr.mxu1 %v378_v43 }
 0x200   : > { %1163 = vmatpush3.msra.mxu1 %v378_v43 }
 0x201   : > { %1164 = vmatprep.subr.mxu1 %v377_v44 }
 0x202   : > { %1165 = vmatpush3.msra.mxu1 %v377_v44 }
 0x203   : > { %1167 = vmatmul.mubr.msk.f32.vlgmr.msra.gmra.mxu1 %vm285_vm2, %v386_v45  ;;  %v1072_v45 = vld [vmem:[%s1790_s1 + $0x20] sm:$0xff] }
 0x204   : > { %1196 = vmatprep.mubr.msk.f32.mxu1 %vm285_vm2, %v1066_v18  ;;  %v1079_v18 = vld [vmem:[%s1792_s3 + $0x28] sm:$0xff] }
 0x206   : > { %v397_v46 = vpop.permute.xlu1 %396 }
 0x208   : > { %v392_v49 = vpop.permute.xlu0 %391 }
 0x20c   : > { %v502_v61 = vpop.permute.xlu0 %501 }
 0x2c3   : > { %v1168_v47 = vpop.f32.mrf.mxu1 }
 0x2c4   : > { %v477_v48 = vadd.f32 %v1168_v47, %v397_v46  ;;  %v1074_v47 = vld [vmem:[%s1791_s2 + $0x20] sm:$0xff] }
 0x2c5   : > { %v471_v50 = vpop.f32.mrf.mxu1 }
 0x2c6   : > { %v1618_v51 = vadd.f32 %v477_v48, %v1534_v0  ;;  %v472_v52 = vadd.f32 %v471_v50, %v392_v49  ;;  %v1075_v48 = vld [vmem:[%s1791_s2 + $0x28] sm:$0xff] }
 0x2c8   : > { %v1621_v53 = vadd.f32 %v472_v52, %v1536_v1  ;;  %vm483_vm7 = vcmp.ge.f32.partialorder %v1618_v51, 0.0  ;;  %v485_v54 = vmul.f32 0.1, %v1618_v51 }
 0x2ca   : > { %v487_v55 = vsel %vm483_vm7, %v1618_v51, %v485_v54  ;;  %v484_v56 = vmul.f32 0.1, %v1621_v53  ;;  %vm482_vm8 = vcmp.ge.f32.partialorder %v1621_v53, 0.0 }
 0x2cb   : > { %490 = vrot.lane.b32.xlu0 %v487_v55, %s1391_s9  ;;  %499 = vrot.lane.b32.xlu1 %v487_v55, %s1390_s7 }
 0x2cc   : > { %v486_v58 = vsel %vm482_vm8, %v1621_v53, %v484_v56 }
 0x2cf   : > { %488 = vrot.lane.b32.xlu0 %v486_v58, %s1391_s9  ;;  %497 = vrot.lane.b32.xlu1 %v486_v58, %s1390_s7  ;;  %s1090_s7 = sshll.u32 %s1448_s22, 8  ;;  %s961_s22 = scalar_lea.sflag [#allocation4], %s1524_s23 }
 0x2d0   : > { %s1745_s11 = scalar_lea.hbm %s1794_s5, %s1090_s7 }
 0x2d3   : > { %514 = vperm.xlu0 %1287, %v1062_v59   ;;  %492 = vrot.lane.b32.xlu1 %v1387_v7, %s1391_s9 }
 0x2d7   : > { %519 = vperm.xlu1 %1288, %v1063_v60  }
 0x33d   : > { %v500_v62 = vpop.permute.xlu1 %499  ;;  %v491_v2 = vpop.permute.xlu0 %490 }
 0x33e   : > { %v505_v63 = vsel %vm503_vm9, %v500_v62, %v502_v61 }
 0x33f   : > { %1169 = vmatprep.subr.mxu0 %v505_v63 }
 0x340   : > { %1170 = vmatpush3.msra.mxu0 %v505_v63 }
 0x341   : > { %v498_v0 = vpop.permute.xlu1 %497  ;;  %v489_v5 = vpop.permute.xlu0 %488 }
 0x342   : > { %v504_v1 = vsel %vm503_vm9, %v498_v0, %v502_v61 }
 0x343   : > { %1171 = vmatprep.subr.mxu0 %v504_v1 }
 0x344   : > { %1172 = vmatpush3.msra.mxu0 %v504_v1 }
 0x345   : > { %1173 = vmatprep.subr.mxu0 %v487_v55  ;;  %v493_v3 = vpop.permute.xlu1 %492 }
 0x346   : > { %1174 = vmatpush3.msra.mxu0 %v487_v55  ;;  %v496_v4 = vsel %vm494_vm10, %v493_v3, %v491_v2  ;;  %v495_v6 = vsel %vm494_vm10, %v493_v3, %v489_v5  ;;  %v1078_v2 = vld [vmem:[%s1792_s3 + $0x20] sm:$0xff] }
 0x347   : > { %1175 = vmatprep.subr.mxu0 %v486_v58 }
 0x348   : > { %1176 = vmatpush3.msra.mxu0 %v486_v58  ;;  %v1073_v58 = vld [vmem:[%s1790_s1 + $0x28] sm:$0xff] }
 0x349   : > { %1177 = vmatprep.subr.mxu0 %v496_v4 }
 0x34a   : > { %1178 = vmatpush3.msra.mxu0 %v496_v4 }
 0x34b   : > { %1179 = vmatprep.subr.mxu0 %v495_v6 }
 0x34c   : > { %1180 = vmatpush3.msra.mxu0 %v495_v6  ;;  %v1080_v6 = vld [vmem:[%s1793_s4 + $0x20] sm:$0xff] }
 0x34d   : > { %1182 = vmatmul.mubr.msk.f32.vlgmr.msra.gmra.mxu0 %vm285_vm2, %v1061_v8  ;;  %v1081_v8 = vld [vmem:[%s1793_s4 + $0x28] sm:$0xff] }
 0x34e   : > { %v515_v13 = vpop.permute.xlu0 %514  ;;  %1211 = vmatprep.mubr.msk.f32.mxu0 %vm285_vm2, %v1072_v45 }
 0x352   : > { %v520_v9 = vpop.permute.xlu1 %519 }
 0x40d   : > { %v1183_v10 = vpop.f32.mrf.mxu0 }
 0x40e   : > { %v600_v11 = vadd.f32 %v1183_v10, %v520_v9 }
 0x40f   : > { %v594_v14 = vpop.f32.mrf.mxu0 }
 0x410   : > { %vm604_vm11 = vcmp.ge.f32.partialorder %v600_v11, 0.0  ;;  %v606_v16 = vmul.f32 0.1, %v600_v11  ;;  %v595_v17 = vadd.f32 %v594_v14, %v515_v13 }
 0x412   : > { %vm603_vm12 = vcmp.ge.f32.partialorder %v595_v17, 0.0  ;;  %v605_v20 = vmul.f32 0.1, %v595_v17  ;;  %v608_v21 = vsel %vm604_vm11, %v600_v11, %v606_v16 }
 0x413   : > { %617 = vrot.lane.b32.xlu1 %v608_v21, %s1386_s12 }
 0x414   : > { %v607_v22 = vsel %vm603_vm12, %v595_v17, %v605_v20 }
 0x415   : > { %615 = vrot.lane.b32.xlu0 %v607_v22, %s1386_s12 }
 0x417   : > { %611 = vrot.lane.b32.xlu1 %v608_v21, %s1388_s15 }
 0x419   : > { %609 = vrot.lane.b32.xlu0 %v607_v22, %s1388_s15 }
 0x41b   : > { %634 = vperm.xlu1 %1288, %v1069_v23  }
 0x41d   : > { %629 = vperm.xlu0 %1287, %v1068_v24  }
 0x421   : > { %739 = vrot.lane.b32.xlu0 %v1387_v7, %s1392_s26 }
 0x485   : > { %v618_v25 = vpop.permute.xlu1 %617 }
 0x486   : > { %v620_v26 = vsel %vm268_vm3, %v618_v25, %v1565_v15 }
 0x487   : > { %v616_v27 = vpop.permute.xlu0 %615  ;;  %1184 = vmatprep.subr.mxu1 %v620_v26 }
 0x488   : > { %1185 = vmatpush3.msra.mxu1 %v620_v26  ;;  %v619_v28 = vsel %vm268_vm3, %v616_v27, %v1565_v15 }
 0x489   : > { %1186 = vmatprep.subr.mxu1 %v619_v28  ;;  %v612_v29 = vpop.permute.xlu1 %611 }
 0x48a   : > { %1187 = vmatpush3.msra.mxu1 %v619_v28  ;;  %v614_v31 = vsel %vm259_vm4, %v1573_v19, %v612_v29 }
 0x48b   : > { %1188 = vmatprep.subr.mxu1 %v608_v21  ;;  %v610_v30 = vpop.permute.xlu0 %609 }
 0x48c   : > { %1189 = vmatpush3.msra.mxu1 %v608_v21  ;;  %v613_v32 = vsel %vm259_vm4, %v1573_v19, %v610_v30 }
 0x48d   : > { %1190 = vmatprep.subr.mxu1 %v607_v22 }
 0x48e   : > { %1191 = vmatpush3.msra.mxu1 %v607_v22 }
 0x48f   : > { %1192 = vmatprep.subr.mxu1 %v614_v31 }
 0x490   : > { %1193 = vmatpush3.msra.mxu1 %v614_v31 }
 0x491   : > { %1194 = vmatprep.subr.mxu1 %v613_v32 }
 0x492   : > { %1195 = vmatpush3.msra.mxu1 %v613_v32 }
 0x493   : > { %1197 = vmatmul.mubr.msk.f32.vlgmr.msra.gmra.mxu1 %vm285_vm2, %v1067_v33 }
 0x494   : > { %1226 = vmatprep.mubr.msk.f32.mxu1 %vm285_vm2, %v1078_v2 }
 0x496   : > { %v635_v34 = vpop.permute.xlu1 %634 }
 0x498   : > { %v630_v37 = vpop.permute.xlu0 %629 }
 0x49c   : > { %v740_v49 = vpop.permute.xlu0 %739 }
 0x553   : > { %v1198_v35 = vpop.f32.mrf.mxu1 }
 0x554   : > { %v715_v36 = vadd.f32 %v1198_v35, %v635_v34 }
 0x555   : > { %v709_v38 = vpop.f32.mrf.mxu1 }
 0x556   : > { %v1678_v39 = vadd.f32 %v715_v36, %v1618_v51  ;;  %v710_v40 = vadd.f32 %v709_v38, %v630_v37 }
 0x558   : > { %v1681_v41 = vadd.f32 %v710_v40, %v1621_v53  ;;  %vm721_vm13 = vcmp.ge.f32.partialorder %v1678_v39, 0.0  ;;  %v723_v42 = vmul.f32 0.1, %v1678_v39 }
 0x55a   : > { %v725_v43 = vsel %vm721_vm13, %v1678_v39, %v723_v42  ;;  %v722_v44 = vmul.f32 0.1, %v1681_v41  ;;  %vm720_vm14 = vcmp.ge.f32.partialorder %v1681_v41, 0.0 }
 0x55b   : > { %728 = vrot.lane.b32.xlu0 %v725_v43, %s1393_s28  ;;  %737 = vrot.lane.b32.xlu1 %v725_v43, %s1392_s26 }
 0x55c   : > { %v724_v46 = vsel %vm720_vm14, %v1681_v41, %v722_v44 }
 0x55f   : > { %726 = vrot.lane.b32.xlu0 %v724_v46, %s1393_s28  ;;  %735 = vrot.lane.b32.xlu1 %v724_v46, %s1392_s26  ;;  %s1323_s26 = scalar_lea.vmem %s1322_s17, 512 }
 0x560   : > { %p1325_p7 = scmp.lt.s32.totalorder %s1323_s26, %s1317_s25 }
 0x562   : > { %p1326_p8 = por %p1325_p7, %p1324_p5 }
 0x563   : > { %752 = vperm.xlu0 %1287, %v1074_v47   ;;  %730 = vrot.lane.b32.xlu1 %v1387_v7, %s1393_s28 }
 0x564   : > { %p1327_p10 = pnand %p1326_p8, %p1320_p4 }
 0x567   : > { %757 = vperm.xlu1 %1288, %v1075_v48  }
 0x5cd   : > { %v738_v50 = vpop.permute.xlu1 %737  ;;  %v729_v54 = vpop.permute.xlu0 %728 }
 0x5ce   : > { %v743_v51 = vsel %vm741_vm15, %v738_v50, %v740_v49 }
 0x5cf   : > { %1199 = vmatprep.subr.mxu0 %v743_v51 }
 0x5d0   : > { %1200 = vmatpush3.msra.mxu0 %v743_v51 }
 0x5d1   : > { %v736_v52 = vpop.permute.xlu1 %735  ;;  %v727_v56 = vpop.permute.xlu0 %726 }
 0x5d2   : > { %v742_v53 = vsel %vm741_vm15, %v736_v52, %v740_v49 }
 0x5d3   : > { %1201 = vmatprep.subr.mxu0 %v742_v53 }
 0x5d4   : > { %1202 = vmatpush3.msra.mxu0 %v742_v53 }
 0x5d5   : > { %1203 = vmatprep.subr.mxu0 %v725_v43  ;;  %v731_v55 = vpop.permute.xlu1 %730 }
 0x5d6   : > { %1204 = vmatpush3.msra.mxu0 %v725_v43  ;;  %v734_v7 = vsel %vm732_vm0, %v731_v55, %v729_v54  ;;  %v733_v57 = vsel %vm732_vm0, %v731_v55, %v727_v56 }
 0x5d7   : > { %1205 = vmatprep.subr.mxu0 %v724_v46 }
 0x5d8   : > { %1206 = vmatpush3.msra.mxu0 %v724_v46 }
 0x5d9   : > { %1207 = vmatprep.subr.mxu0 %v734_v7 }
 0x5da   : > { %1208 = vmatpush3.msra.mxu0 %v734_v7 }
 0x5db   : > { %1209 = vmatprep.subr.mxu0 %v733_v57 }
 0x5dc   : > { %1210 = vmatpush3.msra.mxu0 %v733_v57 }
 0x5dd   : > { %1212 = vmatmul.mubr.msk.f32.vlgmr.msra.gmra.mxu0 %vm285_vm2, %v1073_v58 }
 0x5de   : > { %v753_v62 = vpop.permute.xlu0 %752 }
 0x5e2   : > { %v758_v59 = vpop.permute.xlu1 %757 }
 0x69d   : > { %v1213_v60 = vpop.f32.mrf.mxu0 }
 0x69e   : > { %v838_v61 = vadd.f32 %v1213_v60, %v758_v59 }
 0x69f   : > { %v832_v63 = vpop.f32.mrf.mxu0 }
 0x6a0   : > { %vm842_vm1 = vcmp.ge.f32.partialorder %v838_v61, 0.0  ;;  %v844_v0 = vmul.f32 0.1, %v838_v61  ;;  %v833_v1 = vadd.f32 %v832_v63, %v753_v62 }
 0x6a2   : > { %vm841_vm5 = vcmp.ge.f32.partialorder %v833_v1, 0.0  ;;  %v843_v3 = vmul.f32 0.1, %v833_v1  ;;  %v846_v4 = vsel %vm842_vm1, %v838_v61, %v844_v0 }
 0x6a3   : > { %855 = vrot.lane.b32.xlu1 %v846_v4, %s1386_s12 }
 0x6a4   : > { %v845_v5 = vsel %vm841_vm5, %v833_v1, %v843_v3 }
 0x6a5   : > { %853 = vrot.lane.b32.xlu0 %v845_v5, %s1386_s12 }
 0x6a7   : > { %849 = vrot.lane.b32.xlu1 %v846_v4, %s1388_s15 }
 0x6a9   : > { %847 = vrot.lane.b32.xlu0 %v845_v5, %s1388_s15 }
 0x6ab   : > { %867 = vperm.xlu1 %1288, %v1080_v6  }
 0x6ad   : > { %872 = vperm.xlu0 %1287, %v1081_v8  }
 0x715   : > { %v856_v9 = vpop.permute.xlu1 %855 }
 0x716   : > { %v858_v10 = vsel %vm268_vm3, %v856_v9, %v1565_v15 }
 0x717   : > { %v854_v11 = vpop.permute.xlu0 %853  ;;  %1214 = vmatprep.subr.mxu1 %v858_v10 }
 0x718   : > { %1215 = vmatpush3.msra.mxu1 %v858_v10  ;;  %v857_v13 = vsel %vm268_vm3, %v854_v11, %v1565_v15 }
 0x719   : > { %1216 = vmatprep.subr.mxu1 %v857_v13  ;;  %v850_v14 = vpop.permute.xlu1 %849 }
 0x71a   : > { %1217 = vmatpush3.msra.mxu1 %v857_v13  ;;  %v852_v17 = vsel %vm259_vm4, %v1573_v19, %v850_v14 }
 0x71b   : > { %1218 = vmatprep.subr.mxu1 %v846_v4  ;;  %v848_v16 = vpop.permute.xlu0 %847 }
 0x71c   : > { %1219 = vmatpush3.msra.mxu1 %v846_v4  ;;  %v851_v15 = vsel %vm259_vm4, %v1573_v19, %v848_v16 }
 0x71d   : > { %1220 = vmatprep.subr.mxu1 %v845_v5 }
 0x71e   : > { %1221 = vmatpush3.msra.mxu1 %v845_v5 }
 0x71f   : > { %1222 = vmatprep.subr.mxu1 %v852_v17 }
 0x720   : > { %1223 = vmatpush3.msra.mxu1 %v852_v17 }
 0x721   : > { %1224 = vmatprep.subr.mxu1 %v851_v15 }
 0x722   : > { %1225 = vmatpush3.msra.mxu1 %v851_v15 }
 0x723   : > { %1227 = vmatmul.mubr.msk.f32.vlgmr.msra.gmra.mxu1 %vm285_vm2, %v1079_v18 }
 0x726   : > { %v868_v23 = vpop.permute.xlu1 %867 }
 0x728   : > { %v873_v20 = vpop.permute.xlu0 %872 }
 0x7e3   : > { %v1228_v21 = vpop.f32.mrf.mxu1 }
 0x7e4   : > { %v953_v22 = vadd.f32 %v1228_v21, %v873_v20 }
 0x7e5   : > { %v947_v12 = vpop.f32.mrf.mxu1 }
 0x7e6   : > { %v957_v19 = vadd.f32 %v953_v22, %v1678_v39  ;;  %v948_v24 = vadd.f32 %v947_v12, %v868_v23 }
 0x7e8   : > { %959 = vst [vmem:[%s242_s16 + $0x8] sm:$0xff] %v957_v19  ;;  %v956_v25 = vadd.f32 %v948_v24, %v1681_v41 }
 0x7ea   : > { %958 = vst [vmem:[%s242_s16] sm:$0xff] %v956_v25 }
 0x7eb   : > { %1330 = shalt.err (!%p1327_p10)
}
 0x7ec   : > { %s1331_s28 = scalar_lea.hbm %s1745_s11, 256  ;;  %s1335_s12 = scalar_lea.hbm %s1794_s5, 512 }
 0x7ed   : > { %p1332_p0 = scmp.ne.s32.totalorder %s1745_s11, %s1331_s28  ;;  %p1336_p1 = scmp.lt.s32.totalorder %s1745_s11, %s1794_s5 }
 0x7ee   : > { %p1337_p3 = scmp.lt.s32.totalorder %s1335_s12, %s1331_s28 }
 0x7ef   : > { %p1333_p2 = pnand %p1332_p0, %p1803_p12 }
 0x7f0   : > { %p1338_p6 = por %p1337_p3, %p1336_p1 }
 0x7f1   : > { %p1334_p9 = pneg %p1333_p2 }
 0x7f3   : > { %p1339_p11 = pnand %p1338_p6, %p1334_p9 }
 0x7f5   : > { %1342 = shalt.err (!%p1339_p11)
}
 0x7f6   : > { %s1395_s7 = smov 128   ;;  %s1396_s9 = smov 8  }
 0x7f7   : > { %1231 = dma.vmem_to_hbm [thread:$0]  (%p1803_p12), %s1740_s8, 256, %s1745_s11, %s961_s22, %s1395_s7, %s1395_s7, %s1396_s9  }
 0x7f8 PF: > { %s989_s10 = sand.u32 1, %s1369_s18   ;;  %p1804_p13 = scmp.ne.s32.totalorder %s1800_s6, 0 }
 0x7f9   : > { %p1805_p4 = scmp.ge.s32.totalorder %s1381_s21, 2  ;;  %s990_s25 = scalar_lea.sflag [#allocation4], %s989_s10 }
 0x7fb   : > { %p1238_p5 = pnand %p1805_p4, %p1804_p13 }
 0x7fd   : > { %p1239_p7 = pneg %p1238_p5 }
 0x7ff   : > { %1364 = dma.done.wait (%p1239_p7), %s990_s25, 256  }
 0x800   : > { %1366 = vsyncadd (%p1239_p7), %s990_s25, 4294967040  ;;  %p18_p8 = scmp.ge.s32.totalorder %s1452_s24, 4   ;;  %s1806_s18 = smov %s1373_s19 }
 0x801   : > { %s1807_s19 = smov %s1377_s20  ;;  %s1808_s20 = smov %s1464_s27 }
 0x802   : > { %s1809_s21 = smov %s1452_s24  ;;  %20 = sbr.rel (!%p18_p8) target bundleno = 5 (0x5), region = 93 }
 0x807   :  { %995 = vsyncpa [#allocation3], 1 }
 0x808   :  { %997 = vsyncpa [#allocation3 + $0x1], 1 }
 0x809   :  { %998 = vsyncpa [#allocation4], 1 }
 0x80a   :  { %1000 = vsyncpa [#allocation4 + $0x1], 1 }

</bundles_post_ra>
